<compile_context>
chip_gen: v5e
topology: v5e:2x2
jax: 0.10.0
libtpu: 0.0.40
codegen_flags: <defaults>
</compile_context>

<pallas_src>
import jax
import jax.numpy as jnp
from jax.experimental import pallas as pl
from jax.experimental.pallas import tpu as pltpu


def _biaffine_kernel(x1_ref, x2t_ref, wmain_ref, wrow_ref, wcol_ref, wconst_ref,
                     out_ref):
    # x1_ref    : (1, TL1, D1)    compute dtype (bf16)
    # x2t_ref   : (1, D2, L2p)    compute dtype (x2 transposed, L2 zero-padded to 128x)
    # wmain_ref : (TO, D1, D2)    compute dtype  -- Wr[:D1, o, :D2]
    # wrow_ref  : (TO, 1, D2)     float32        -- Wr[D1,  o, :D2]  (x1 ones-column)
    # wcol_ref  : (TO, 1, D1)     float32        -- Wr[:D1, o, D2]   (x2 ones-column)
    # wconst_ref: (TO, 1, 1)      float32        -- Wr[D1,  o, D2]
    # out_ref   : (1, TO, TL1, L2p)
    x1 = x1_ref[0]                       # (TL1, D1)
    x2t = x2t_ref[0]                     # (D2, L2p)
    x1f = x1.astype(jnp.float32)         # hoisted out of the class loop
    n_cls = wmain_ref.shape[0]

    for o in range(n_cls):               # static unroll over the small O-chunk
        # GEMM1 (MXU): t[i, b] = sum_a x1[i, a] * Wr[a, o, b]
        t = jnp.dot(x1, wmain_ref[o], preferred_element_type=jnp.float32)
        # split-contraction for x1's ones column (cheap VPU broadcast-add)
        t = t + wrow_ref[o]                                        # (TL1, D2) f32
        # GEMM2 (MXU): s[i, j] = sum_b t[i, b] * x2[j, b]; K stays exactly D2
        s = jnp.dot(t.astype(x2t.dtype), x2t,
                    preferred_element_type=jnp.float32)            # (TL1, L2p)
        # split-contraction for x2's ones column (VPU mul + lane reduce, under MXU slack)
        c = jnp.sum(x1f * wcol_ref[o], axis=1, keepdims=True)      # (TL1, 1)
        out_ref[0, o] = (s + c + wconst_ref[o]).astype(out_ref.dtype)


def prepare_pairwise_biaffine_params(weight, *, compute_dtype=jnp.bfloat16):
    """One-off weight prep; hoist out of the per-call path for repeated calls."""
    D1p, D2p, O = weight.shape
    D1, D2 = D1p - 1, D2p - 1
    # torch's .view chain == raw row-major reinterpretation of the parameter memory:
    Wr = jnp.reshape(weight, (D1p, O, D2p))
    wmain = jnp.transpose(Wr[:D1, :, :D2], (1, 0, 2)).astype(compute_dtype)  # (O,D1,D2)
    wrow = Wr[D1, :, :D2][:, None, :].astype(jnp.float32)                    # (O,1,D2)
    wcol = jnp.transpose(Wr[:D1, :, D2])[:, None, :].astype(jnp.float32)     # (O,1,D1)
    wconst = Wr[D1, :, D2][:, None, None].astype(jnp.float32)                # (O,1,1)
    return wmain, wrow, wcol, wconst


def _pick_tiles(N, L1, D1, D2, L2p, O, out_itemsize, block_l1, block_o):
    mib = 1024 * 1024
    try:
        vmem_cap = int(pltpu.get_tpu_info().vmem_capacity_bytes)
    except Exception:
        vmem_cap = 64 * mib                    # conservative (v7x-sized) fallback
    vmem_limit = min((vmem_cap * 3) // 4, 112 * mib)
    budget = vmem_limit - 6 * mib              # headroom for compiler-internal scratch

    if block_l1 is None:
        # 256 fills the v6e MXU M-dim; 64-MiB v7x parts default to 128.
        block_l1 = 256 if vmem_cap >= 100 * mib else 128
    tl1 = L1 if L1 <= block_l1 else max(8, (block_l1 // 8) * 8)

    if O <= block_o:
        to = O
    else:
        to = block_o
        for cand in range(block_o, 1, -1):     # prefer an exact divisor (no ragged tail)
            if O % cand == 0:
                to = cand
                break

    def footprint(tl1_, to_):
        cdt = 2  # bf16 bytes
        f = 0
        f += 2 * tl1_ * D1 * cdt                        # x1 block       (double buffered)
        f += 2 * D2 * L2p * cdt                         # x2t block
        f += 2 * to_ * D1 * D2 * cdt                    # wmain block
        f += 2 * to_ * 8 * max(D2, 128) * 4             # wrow  (tile-padded, f32)
        f += 2 * to_ * 8 * max(D1, 128) * 4             # wcol
        f += 2 * to_ * 8 * 128 * 4                      # wconst
        f += 2 * to_ * tl1_ * L2p * out_itemsize        # out block
        f += tl1_ * D1 * 4                              # x1f            (live values)
        f += tl1_ * D2 * 6                              # t (f32 + bf16 copy)
        f += tl1_ * L2p * 4                             # s
        f += tl1_ * 128 * 4                             # c
        return f

    while footprint(tl1, to) > budget:
        if tl1 > 128 or (tl1 > 8 and to == 1):
            tl1 = max(8, ((tl1 // 2) // 8) * 8)
        elif to > 1:
            to = max(1, to // 2)
        else:
            break

    # v7x megacore: make sure the parallel grid has at least 2 tiles to shard.
    if pl.cdiv(O, to) * N * pl.cdiv(L1, tl1) < 2 and L1 > 8:
        tl1 = max(8, (((tl1 + 1) // 2 + 7) // 8) * 8)

    return tl1, to, int(vmem_limit)


def pairwise_biaffine_scorer(x1, x2, weight, *,
                             compute_dtype=jnp.bfloat16,
                             out_dtype=None,
                             block_l1=None,
                             block_o=8,
                             transpose_output=True,
                             params=None):
    """x1: (N, L1, D1), x2: (N, L2, D2), weight: (D1+1, D2+1, O).

    Returns (N, L1, L2, O) like the PyTorch module (or (N, O, L1, L2) when
    transpose_output=False, skipping one full extra HBM pass over the output).
    """
    N, L1, D1 = x1.shape
    N2, L2, D2 = x2.shape
    assert N == N2
    D1p, D2p, O = weight.shape
    assert D1p == D1 + 1 and D2p == D2 + 1
    out_dtype = x1.dtype if out_dtype is None else out_dtype
    out_itemsize = jnp.dtype(out_dtype).itemsize

    if params is None:
        params = prepare_pairwise_biaffine_params(weight, compute_dtype=compute_dtype)
    wmain, wrow, wcol, wconst = params

    # x2 pre-transposed once so GEMM2 is a canonical (M,K)@(K,N) with L2 on lanes;
    # L2 padded to a 128 multiple so all output stores stay unmasked / lane-dense.
    L2p = ((L2 + 127) // 128) * 128
    x2t = jnp.swapaxes(x2, 1, 2)
    if L2p != L2:
        x2t = jnp.pad(x2t, ((0, 0), (0, 0), (0, L2p - L2)))
    x2t = x2t.astype(compute_dtype)
    x1c = x1.astype(compute_dtype)

    TL1, TO, vmem_limit = _pick_tiles(N, L1, D1, D2, L2p, O, out_itemsize,
                                      block_l1, block_o)
    n_o = pl.cdiv(O, TO)
    n_l1 = pl.cdiv(L1, TL1)

    flops = 2 * N * L1 * O * D2 * (D1 + L2p) + 2 * N * L1 * O * D1
    bytes_accessed = (n_o * (x1c.size * 2 + x2t.size * 2)
                      + wmain.size * 2
                      + (wrow.size + wcol.size + wconst.size) * 4
                      + N * O * L1 * L2p * out_itemsize)

    out = pl.pallas_call(
        _biaffine_kernel,
        out_shape=jax.ShapeDtypeStruct((N, O, L1, L2p), out_dtype),
        grid_spec=pltpu.PrefetchScalarGridSpec(
            num_scalar_prefetch=0,
            grid=(n_o, N, n_l1),
            in_specs=[
                pl.BlockSpec((1, TL1, D1), lambda o, n, i: (n, i, 0)),
                pl.BlockSpec((1, D2, L2p), lambda o, n, i: (n, 0, 0)),
                pl.BlockSpec((TO, D1, D2), lambda o, n, i: (o, 0, 0)),
                pl.BlockSpec((TO, 1, D2), lambda o, n, i: (o, 0, 0)),
                pl.BlockSpec((TO, 1, D1), lambda o, n, i: (o, 0, 0)),
                pl.BlockSpec((TO, 1, 1), lambda o, n, i: (o, 0, 0)),
            ],
            out_specs=pl.BlockSpec((1, TO, TL1, L2p), lambda o, n, i: (n, o, i, 0)),
        ),
        compiler_params=pltpu.CompilerParams(
            dimension_semantics=("parallel", "parallel", "parallel"),
            vmem_limit_bytes=vmem_limit,
        ),
        cost_estimate=pl.CostEstimate(
            flops=int(flops), transcendentals=0, bytes_accessed=int(bytes_accessed)),
    )(x1c, x2t, wmain, wrow, wcol, wconst)

    if L2p != L2:
        out = out[:, :, :, :L2]
    if transpose_output:
        out = jnp.transpose(out, (0, 2, 3, 1))    # module layout (N, L1, L2, O)
    return out


def reference_f32(x1, x2, weight):
    """Module semantics at full f32 precision."""
    N, L1, _ = x1.shape
    _, L2, _ = x2.shape
    D1p, D2p, O = weight.shape
    x1p = jnp.concatenate([x1, jnp.ones((N, L1, 1), x1.dtype)], axis=-1)
    x2p = jnp.concatenate([x2, jnp.ones((N, L2, 1), x2.dtype)], axis=-1)
    Wr = jnp.reshape(weight, (D1p, O, D2p))
    return jnp.einsum('nia,aob,njb->nijo', x1p, Wr, x2p)


def reference_mirrored(x1, x2, weight, compute_dtype=jnp.bfloat16):
    """Same math, mirroring the kernel's bf16-operand / f32-accumulate path."""
    N, L1, D1 = x1.shape
    _, L2, D2 = x2.shape
    D1p, D2p, O = weight.shape
    Wr = jnp.reshape(weight, (D1p, O, D2p))
    wmain = Wr[:D1, :, :D2].astype(compute_dtype)            # (D1, O, D2)
    wrow = Wr[D1, :, :D2].astype(jnp.float32)                # (O, D2)
    wcol = Wr[:D1, :, D2].astype(jnp.float32)                # (D1, O)
    wconst = Wr[D1, :, D2].astype(jnp.float32)               # (O,)
    x1c = x1.astype(compute_dtype)
    x2c = x2.astype(compute_dtype)
    t = jnp.einsum('nia,aob->niob', x1c, wmain,
                   preferred_element_type=jnp.float32) + wrow[None, None]
    s = jnp.einsum('niob,njb->nijo', t.astype(compute_dtype), x2c,
                   preferred_element_type=jnp.float32)
    c = jnp.einsum('nia,ao->nio', x1c.astype(jnp.float32), wcol) + wconst[None, None]
    return (s + c[:, :, None, :]).astype(x1.dtype)


if __name__ == "__main__":
    # Small shapes consistent with the module's (N, L, D) inputs.
    N, L1, L2, D1, D2, O = 2, 8, 16, 32, 24, 4

    key = jax.random.PRNGKey(0)
    k1, k2, kw = jax.random.split(key, 3)
    x1 = jax.random.normal(k1, (N, L1, D1), dtype=jnp.float32)
    x2 = jax.random.normal(k2, (N, L2, D2), dtype=jnp.float32)

    # W_bilin parameters: weight (D1+1, D2+1, O).  The module also declares bias (O,)
    # but PairwiseBilinear.forward never adds it, so it is intentionally not applied.
    weight = 0.1 * jax.random.normal(kw, (D1 + 1, D2 + 1, O), dtype=jnp.float32)

    out = jax.block_until_ready(pairwise_biaffine_scorer(x1, x2, weight))
    assert out.shape == (N, L1, L2, O), out.shape

    # Check against a pure-JAX reference mirroring the kernel's precision path.
    ref_m = jax.block_until_ready(reference_mirrored(x1, x2, weight))
    assert jnp.allclose(out, ref_m, atol=2e-2, rtol=2e-2), (
        "mismatch vs mirrored-precision reference, max abs err = "
        f"{jnp.max(jnp.abs(out - ref_m))}")

    # Sanity check against full-f32 module semantics (norm-relative; bf16 operand
    # rounding makes an elementwise f32 comparison too strict).
    ref_f = jax.block_until_ready(reference_f32(x1, x2, weight))
    rel = jnp.linalg.norm(out - ref_f) / jnp.linalg.norm(ref_f)
    assert rel < 2e-2, f"relative error vs f32 reference too large: {rel}"

    print("KERNEL_OK")
</pallas_src>

<mosaic_0001>
module attributes {stable_mosaic.version = 11 : i64} {
  func.func @_biaffine_kernel(%arg0: i32, %arg1: i32, %arg2: i32, %arg3: memref<1x8x32xbf16, #tpu.memory_space<vmem>>, %arg4: memref<1x24x128xbf16, #tpu.memory_space<vmem>>, %arg5: memref<4x32x24xbf16, #tpu.memory_space<vmem>>, %arg6: memref<4x1x24xf32, #tpu.memory_space<vmem>>, %arg7: memref<4x1x32xf32, #tpu.memory_space<vmem>>, %arg8: memref<4x1x1xf32, #tpu.memory_space<vmem>>, %arg9: memref<1x4x8x128xf32, #tpu.memory_space<vmem>>) attributes {dimension_semantics = [#tpu.dimension_semantics<parallel>, #tpu.dimension_semantics<parallel>, #tpu.dimension_semantics<parallel>], iteration_bounds = array<i64: 1, 2, 1>, scalar_prefetch = 0 : i64, scratch_operands = 0 : i64, tpu.core_type = #tpu.core_type<tc>, window_params = [{transform_indices = @transform_0, window_bounds = array<i64: 1, 8, 32>}, {transform_indices = @transform_1, window_bounds = array<i64: 1, 24, 128>}, {transform_indices = @transform_2, window_bounds = array<i64: 4, 32, 24>}, {transform_indices = @transform_3, window_bounds = array<i64: 4, 1, 24>}, {transform_indices = @transform_4, window_bounds = array<i64: 4, 1, 32>}, {transform_indices = @transform_5, window_bounds = array<i64: 4, 1, 1>}, {transform_indices = @transform_6, window_bounds = array<i64: 1, 4, 8, 128>}]} {
    %c0 = arith.constant 0 : index
    %c0_0 = arith.constant 0 : index
    %c0_1 = arith.constant 0 : index
    %0 = vector.load %arg3[%c0, %c0_0, %c0_1] : memref<1x8x32xbf16, #tpu.memory_space<vmem>>, vector<1x8x32xbf16>
    %1 = vector.shape_cast %0 : vector<1x8x32xbf16> to vector<8x32xbf16>
    %c0_2 = arith.constant 0 : index
    %c0_3 = arith.constant 0 : index
    %c0_4 = arith.constant 0 : index
    %2 = vector.load %arg4[%c0_2, %c0_3, %c0_4] : memref<1x24x128xbf16, #tpu.memory_space<vmem>>, vector<1x24x128xbf16>
    %3 = vector.shape_cast %2 : vector<1x24x128xbf16> to vector<24x128xbf16>
    %4 = arith.extf %1 : vector<8x32xbf16> to vector<8x32xf32>
    %c0_5 = arith.constant 0 : index
    %c0_6 = arith.constant 0 : index
    %c0_7 = arith.constant 0 : index
    %5 = vector.load %arg5[%c0_5, %c0_6, %c0_7] : memref<4x32x24xbf16, #tpu.memory_space<vmem>>, vector<1x32x24xbf16>
    %6 = vector.shape_cast %5 : vector<1x32x24xbf16> to vector<32x24xbf16>
    %cst = arith.constant dense<0.000000e+00> : vector<8x24xf32>
    %7 = tpu.matmul %1, %6, %cst {dimension_numbers = #tpu.dot_dimension_numbers<[1], [0], [0], [1], [0, 0, 1, 1], [], []>} : vector<8x32xbf16>, vector<32x24xbf16>, vector<8x24xf32> -> vector<8x24xf32>
    %c0_8 = arith.constant 0 : index
    %c0_9 = arith.constant 0 : index
    %c0_10 = arith.constant 0 : index
    %8 = vector.load %arg6[%c0_8, %c0_9, %c0_10] : memref<4x1x24xf32, #tpu.memory_space<vmem>>, vector<1x1x24xf32>
    %9 = vector.shape_cast %8 : vector<1x1x24xf32> to vector<1x24xf32>
    %10 = vector.broadcast %9 : vector<1x24xf32> to vector<8x24xf32>
    %11 = arith.addf %7, %10 : vector<8x24xf32>
    %12 = arith.truncf %11 : vector<8x24xf32> to vector<8x24xbf16>
    %cst_11 = arith.constant dense<0.000000e+00> : vector<8x128xf32>
    %13 = tpu.matmul %12, %3, %cst_11 {dimension_numbers = #tpu.dot_dimension_numbers<[1], [0], [0], [1], [0, 0, 1, 1], [], []>} : vector<8x24xbf16>, vector<24x128xbf16>, vector<8x128xf32> -> vector<8x128xf32>
    %c0_12 = arith.constant 0 : index
    %c0_13 = arith.constant 0 : index
    %c0_14 = arith.constant 0 : index
    %14 = vector.load %arg7[%c0_12, %c0_13, %c0_14] : memref<4x1x32xf32, #tpu.memory_space<vmem>>, vector<1x1x32xf32>
    %15 = vector.shape_cast %14 : vector<1x1x32xf32> to vector<1x32xf32>
    %16 = vector.broadcast %15 : vector<1x32xf32> to vector<8x32xf32>
    %17 = arith.mulf %4, %16 : vector<8x32xf32>
    %cst_15 = arith.constant dense<0.000000e+00> : vector<8xf32>
    %18 = vector.multi_reduction <add>, %17, %cst_15 [1] : vector<8x32xf32> to vector<8xf32>
    %19 = vector.shape_cast %18 : vector<8xf32> to vector<8x1xf32>
    %20 = vector.broadcast %19 : vector<8x1xf32> to vector<8x128xf32>
    %21 = arith.addf %13, %20 : vector<8x128xf32>
    %c0_16 = arith.constant 0 : index
    %c0_17 = arith.constant 0 : index
    %c0_18 = arith.constant 0 : index
    %22 = vector.load %arg8[%c0_16, %c0_17, %c0_18] : memref<4x1x1xf32, #tpu.memory_space<vmem>>, vector<1x1x1xf32>
    %23 = vector.shape_cast %22 : vector<1x1x1xf32> to vector<1x1xf32>
    %24 = vector.broadcast %23 : vector<1x1xf32> to vector<8x128xf32>
    %25 = arith.addf %21, %24 : vector<8x128xf32>
    %c0_19 = arith.constant 0 : index
    %c0_20 = arith.constant 0 : index
    %c0_21 = arith.constant 0 : index
    %c0_22 = arith.constant 0 : index
    %26 = vector.load %arg9[%c0_19, %c0_20, %c0_21, %c0_22] : memref<1x4x8x128xf32, #tpu.memory_space<vmem>>, vector<1x1x8x128xf32>
    %27 = vector.shape_cast %26 : vector<1x1x8x128xf32> to vector<8x128xf32>
    %28 = vector.shape_cast %25 : vector<8x128xf32> to vector<1x1x8x128xf32>
    tpu.vector_store %arg9[%c0_19, %c0_20, %c0_21, %c0_22], %28 {strides = array<i32>} : memref<1x4x8x128xf32, #tpu.memory_space<vmem>>, vector<1x1x8x128xf32>,
    %c1 = arith.constant 1 : index
    %c0_23 = arith.constant 0 : index
    %c0_24 = arith.constant 0 : index
    %29 = vector.load %arg5[%c1, %c0_23, %c0_24] : memref<4x32x24xbf16, #tpu.memory_space<vmem>>, vector<1x32x24xbf16>
    %30 = vector.shape_cast %29 : vector<1x32x24xbf16> to vector<32x24xbf16>
    %cst_25 = arith.constant dense<0.000000e+00> : vector<8x24xf32>
    %31 = tpu.matmul %1, %30, %cst_25 {dimension_numbers = #tpu.dot_dimension_numbers<[1], [0], [0], [1], [0, 0, 1, 1], [], []>} : vector<8x32xbf16>, vector<32x24xbf16>, vector<8x24xf32> -> vector<8x24xf32>
    %c1_26 = arith.constant 1 : index
    %c0_27 = arith.constant 0 : index
    %c0_28 = arith.constant 0 : index
    %32 = vector.load %arg6[%c1_26, %c0_27, %c0_28] : memref<4x1x24xf32, #tpu.memory_space<vmem>>, vector<1x1x24xf32>
    %33 = vector.shape_cast %32 : vector<1x1x24xf32> to vector<1x24xf32>
    %34 = vector.broadcast %33 : vector<1x24xf32> to vector<8x24xf32>
    %35 = arith.addf %31, %34 : vector<8x24xf32>
    %36 = arith.truncf %35 : vector<8x24xf32> to vector<8x24xbf16>
    %cst_29 = arith.constant dense<0.000000e+00> : vector<8x128xf32>
    %37 = tpu.matmul %36, %3, %cst_29 {dimension_numbers = #tpu.dot_dimension_numbers<[1], [0], [0], [1], [0, 0, 1, 1], [], []>} : vector<8x24xbf16>, vector<24x128xbf16>, vector<8x128xf32> -> vector<8x128xf32>
    %c1_30 = arith.constant 1 : index
    %c0_31 = arith.constant 0 : index
    %c0_32 = arith.constant 0 : index
    %38 = vector.load %arg7[%c1_30, %c0_31, %c0_32] : memref<4x1x32xf32, #tpu.memory_space<vmem>>, vector<1x1x32xf32>
    %39 = vector.shape_cast %38 : vector<1x1x32xf32> to vector<1x32xf32>
    %40 = vector.broadcast %39 : vector<1x32xf32> to vector<8x32xf32>
    %41 = arith.mulf %4, %40 : vector<8x32xf32>
    %cst_33 = arith.constant dense<0.000000e+00> : vector<8xf32>
    %42 = vector.multi_reduction <add>, %41, %cst_33 [1] : vector<8x32xf32> to vector<8xf32>
    %43 = vector.shape_cast %42 : vector<8xf32> to vector<8x1xf32>
    %44 = vector.broadcast %43 : vector<8x1xf32> to vector<8x128xf32>
    %45 = arith.addf %37, %44 : vector<8x128xf32>
    %c1_34 = arith.constant 1 : index
    %c0_35 = arith.constant 0 : index
    %c0_36 = arith.constant 0 : index
    %46 = vector.load %arg8[%c1_34, %c0_35, %c0_36] : memref<4x1x1xf32, #tpu.memory_space<vmem>>, vector<1x1x1xf32>
    %47 = vector.shape_cast %46 : vector<1x1x1xf32> to vector<1x1xf32>
    %48 = vector.broadcast %47 : vector<1x1xf32> to vector<8x128xf32>
    %49 = arith.addf %45, %48 : vector<8x128xf32>
    %c0_37 = arith.constant 0 : index
    %c1_38 = arith.constant 1 : index
    %c0_39 = arith.constant 0 : index
    %c0_40 = arith.constant 0 : index
    %50 = vector.load %arg9[%c0_37, %c1_38, %c0_39, %c0_40] : memref<1x4x8x128xf32, #tpu.memory_space<vmem>>, vector<1x1x8x128xf32>
    %51 = vector.shape_cast %50 : vector<1x1x8x128xf32> to vector<8x128xf32>
    %52 = vector.shape_cast %49 : vector<8x128xf32> to vector<1x1x8x128xf32>
    tpu.vector_store %arg9[%c0_37, %c1_38, %c0_39, %c0_40], %52 {strides = array<i32>} : memref<1x4x8x128xf32, #tpu.memory_space<vmem>>, vector<1x1x8x128xf32>,
    %c2 = arith.constant 2 : index
    %c0_41 = arith.constant 0 : index
    %c0_42 = arith.constant 0 : index
    %53 = vector.load %arg5[%c2, %c0_41, %c0_42] : memref<4x32x24xbf16, #tpu.memory_space<vmem>>, vector<1x32x24xbf16>
    %54 = vector.shape_cast %53 : vector<1x32x24xbf16> to vector<32x24xbf16>
    %cst_43 = arith.constant dense<0.000000e+00> : vector<8x24xf32>
    %55 = tpu.matmul %1, %54, %cst_43 {dimension_numbers = #tpu.dot_dimension_numbers<[1], [0], [0], [1], [0, 0, 1, 1], [], []>} : vector<8x32xbf16>, vector<32x24xbf16>, vector<8x24xf32> -> vector<8x24xf32>
    %c2_44 = arith.constant 2 : index
    %c0_45 = arith.constant 0 : index
    %c0_46 = arith.constant 0 : index
    %56 = vector.load %arg6[%c2_44, %c0_45, %c0_46] : memref<4x1x24xf32, #tpu.memory_space<vmem>>, vector<1x1x24xf32>
    %57 = vector.shape_cast %56 : vector<1x1x24xf32> to vector<1x24xf32>
    %58 = vector.broadcast %57 : vector<1x24xf32> to vector<8x24xf32>
    %59 = arith.addf %55, %58 : vector<8x24xf32>
    %60 = arith.truncf %59 : vector<8x24xf32> to vector<8x24xbf16>
    %cst_47 = arith.constant dense<0.000000e+00> : vector<8x128xf32>
    %61 = tpu.matmul %60, %3, %cst_47 {dimension_numbers = #tpu.dot_dimension_numbers<[1], [0], [0], [1], [0, 0, 1, 1], [], []>} : vector<8x24xbf16>, vector<24x128xbf16>, vector<8x128xf32> -> vector<8x128xf32>
    %c2_48 = arith.constant 2 : index
    %c0_49 = arith.constant 0 : index
    %c0_50 = arith.constant 0 : index
    %62 = vector.load %arg7[%c2_48, %c0_49, %c0_50] : memref<4x1x32xf32, #tpu.memory_space<vmem>>, vector<1x1x32xf32>
    %63 = vector.shape_cast %62 : vector<1x1x32xf32> to vector<1x32xf32>
    %64 = vector.broadcast %63 : vector<1x32xf32> to vector<8x32xf32>
    %65 = arith.mulf %4, %64 : vector<8x32xf32>
    %cst_51 = arith.constant dense<0.000000e+00> : vector<8xf32>
    %66 = vector.multi_reduction <add>, %65, %cst_51 [1] : vector<8x32xf32> to vector<8xf32>
    %67 = vector.shape_cast %66 : vector<8xf32> to vector<8x1xf32>
    %68 = vector.broadcast %67 : vector<8x1xf32> to vector<8x128xf32>
    %69 = arith.addf %61, %68 : vector<8x128xf32>
    %c2_52 = arith.constant 2 : index
    %c0_53 = arith.constant 0 : index
    %c0_54 = arith.constant 0 : index
    %70 = vector.load %arg8[%c2_52, %c0_53, %c0_54] : memref<4x1x1xf32, #tpu.memory_space<vmem>>, vector<1x1x1xf32>
    %71 = vector.shape_cast %70 : vector<1x1x1xf32> to vector<1x1xf32>
    %72 = vector.broadcast %71 : vector<1x1xf32> to vector<8x128xf32>
    %73 = arith.addf %69, %72 : vector<8x128xf32>
    %c0_55 = arith.constant 0 : index
    %c2_56 = arith.constant 2 : index
    %c0_57 = arith.constant 0 : index
    %c0_58 = arith.constant 0 : index
    %74 = vector.load %arg9[%c0_55, %c2_56, %c0_57, %c0_58] : memref<1x4x8x128xf32, #tpu.memory_space<vmem>>, vector<1x1x8x128xf32>
    %75 = vector.shape_cast %74 : vector<1x1x8x128xf32> to vector<8x128xf32>
    %76 = vector.shape_cast %73 : vector<8x128xf32> to vector<1x1x8x128xf32>
    tpu.vector_store %arg9[%c0_55, %c2_56, %c0_57, %c0_58], %76 {strides = array<i32>} : memref<1x4x8x128xf32, #tpu.memory_space<vmem>>, vector<1x1x8x128xf32>,
    %c3 = arith.constant 3 : index
    %c0_59 = arith.constant 0 : index
    %c0_60 = arith.constant 0 : index
    %77 = vector.load %arg5[%c3, %c0_59, %c0_60] : memref<4x32x24xbf16, #tpu.memory_space<vmem>>, vector<1x32x24xbf16>
    %78 = vector.shape_cast %77 : vector<1x32x24xbf16> to vector<32x24xbf16>
    %cst_61 = arith.constant dense<0.000000e+00> : vector<8x24xf32>
    %79 = tpu.matmul %1, %78, %cst_61 {dimension_numbers = #tpu.dot_dimension_numbers<[1], [0], [0], [1], [0, 0, 1, 1], [], []>} : vector<8x32xbf16>, vector<32x24xbf16>, vector<8x24xf32> -> vector<8x24xf32>
    %c3_62 = arith.constant 3 : index
    %c0_63 = arith.constant 0 : index
    %c0_64 = arith.constant 0 : index
    %80 = vector.load %arg6[%c3_62, %c0_63, %c0_64] : memref<4x1x24xf32, #tpu.memory_space<vmem>>, vector<1x1x24xf32>
    %81 = vector.shape_cast %80 : vector<1x1x24xf32> to vector<1x24xf32>
    %82 = vector.broadcast %81 : vector<1x24xf32> to vector<8x24xf32>
    %83 = arith.addf %79, %82 : vector<8x24xf32>
    %84 = arith.truncf %83 : vector<8x24xf32> to vector<8x24xbf16>
    %cst_65 = arith.constant dense<0.000000e+00> : vector<8x128xf32>
    %85 = tpu.matmul %84, %3, %cst_65 {dimension_numbers = #tpu.dot_dimension_numbers<[1], [0], [0], [1], [0, 0, 1, 1], [], []>} : vector<8x24xbf16>, vector<24x128xbf16>, vector<8x128xf32> -> vector<8x128xf32>
    %c3_66 = arith.constant 3 : index
    %c0_67 = arith.constant 0 : index
    %c0_68 = arith.constant 0 : index
    %86 = vector.load %arg7[%c3_66, %c0_67, %c0_68] : memref<4x1x32xf32, #tpu.memory_space<vmem>>, vector<1x1x32xf32>
    %87 = vector.shape_cast %86 : vector<1x1x32xf32> to vector<1x32xf32>
    %88 = vector.broadcast %87 : vector<1x32xf32> to vector<8x32xf32>
    %89 = arith.mulf %4, %88 : vector<8x32xf32>
    %cst_69 = arith.constant dense<0.000000e+00> : vector<8xf32>
    %90 = vector.multi_reduction <add>, %89, %cst_69 [1] : vector<8x32xf32> to vector<8xf32>
    %91 = vector.shape_cast %90 : vector<8xf32> to vector<8x1xf32>
    %92 = vector.broadcast %91 : vector<8x1xf32> to vector<8x128xf32>
    %93 = arith.addf %85, %92 : vector<8x128xf32>
    %c3_70 = arith.constant 3 : index
    %c0_71 = arith.constant 0 : index
    %c0_72 = arith.constant 0 : index
    %94 = vector.load %arg8[%c3_70, %c0_71, %c0_72] : memref<4x1x1xf32, #tpu.memory_space<vmem>>, vector<1x1x1xf32>
    %95 = vector.shape_cast %94 : vector<1x1x1xf32> to vector<1x1xf32>
    %96 = vector.broadcast %95 : vector<1x1xf32> to vector<8x128xf32>
    %97 = arith.addf %93, %96 : vector<8x128xf32>
    %c0_73 = arith.constant 0 : index
    %c3_74 = arith.constant 3 : index
    %c0_75 = arith.constant 0 : index
    %c0_76 = arith.constant 0 : index
    %98 = vector.load %arg9[%c0_73, %c3_74, %c0_75, %c0_76] : memref<1x4x8x128xf32, #tpu.memory_space<vmem>>, vector<1x1x8x128xf32>
    %99 = vector.shape_cast %98 : vector<1x1x8x128xf32> to vector<8x128xf32>
    %100 = vector.shape_cast %97 : vector<8x128xf32> to vector<1x1x8x128xf32>
    tpu.vector_store %arg9[%c0_73, %c3_74, %c0_75, %c0_76], %100 {strides = array<i32>} : memref<1x4x8x128xf32, #tpu.memory_space<vmem>>, vector<1x1x8x128xf32>,
    return
  }
  func.func @transform_0(%arg0: i32, %arg1: i32, %arg2: i32) -> (i32, i32, i32) {
    %c0_i32 = arith.constant 0 : i32
    %c0_i32_0 = arith.constant 0 : i32
    return %arg1, %arg2, %c0_i32 : i32, i32, i32
  }
  func.func @transform_1(%arg0: i32, %arg1: i32, %arg2: i32) -> (i32, i32, i32) {
    %c0_i32 = arith.constant 0 : i32
    %c0_i32_0 = arith.constant 0 : i32
    %c0_i32_1 = arith.constant 0 : i32
    return %arg1, %c0_i32, %c0_i32_0 : i32, i32, i32
  }
  func.func @transform_2(%arg0: i32, %arg1: i32, %arg2: i32) -> (i32, i32, i32) {
    %c0_i32 = arith.constant 0 : i32
    %c0_i32_0 = arith.constant 0 : i32
    %c0_i32_1 = arith.constant 0 : i32
    return %arg0, %c0_i32, %c0_i32_0 : i32, i32, i32
  }
  func.func @transform_3(%arg0: i32, %arg1: i32, %arg2: i32) -> (i32, i32, i32) {
    %c0_i32 = arith.constant 0 : i32
    %c0_i32_0 = arith.constant 0 : i32
    %c0_i32_1 = arith.constant 0 : i32
    return %arg0, %c0_i32, %c0_i32_0 : i32, i32, i32
  }
  func.func @transform_4(%arg0: i32, %arg1: i32, %arg2: i32) -> (i32, i32, i32) {
    %c0_i32 = arith.constant 0 : i32
    %c0_i32_0 = arith.constant 0 : i32
    %c0_i32_1 = arith.constant 0 : i32
    return %arg0, %c0_i32, %c0_i32_0 : i32, i32, i32
  }
  func.func @transform_5(%arg0: i32, %arg1: i32, %arg2: i32) -> (i32, i32, i32) {
    %c0_i32 = arith.constant 0 : i32
    %c0_i32_0 = arith.constant 0 : i32
    %c0_i32_1 = arith.constant 0 : i32
    return %arg0, %c0_i32, %c0_i32_0 : i32, i32, i32
  }
  func.func @transform_6(%arg0: i32, %arg1: i32, %arg2: i32) -> (i32, i32, i32, i32) {
    %c0_i32 = arith.constant 0 : i32
    %c0_i32_0 = arith.constant 0 : i32
    return %arg1, %arg0, %arg2, %c0_i32 : i32, i32, i32, i32
  }
}

</mosaic_0001>

<bundles_post_ra>
// kernel: tpu_custom_call.1
= control target key start
LH: loop header
LB: loop body
LE: loop exit
PB: predicated region body
PF: predicated region fallthrough
CT: control target
= control target key end

     0   :  { %11 = vsyncpa [#allocation3], 0  ;;  %s1316_s0 = inlined_call_operand.vmem [shape: bf16[2,8,32], index: 0, kind: input, shape index: {}]   ;;  %s1317_s1 = inlined_call_operand.vmem [shape: bf16[2,24,128], index: 1, kind: input, shape index: {}]   ;;  %s1318_s2 = inlined_call_operand.vmem [shape: bf16[4,32,24], index: 2, kind: input, shape index: {}]   ;;  %s1319_s3 = inlined_call_operand.vmem [shape: f32[4,1,24], index: 3, kind: input, shape index: {}]   ;;  %s1320_s4 = inlined_call_operand.vmem [shape: f32[4,1,32], index: 4, kind: input, shape index: {}]   ;;  %s1321_s5 = inlined_call_operand.vmem [shape: f32[4,1,1], index: 5, kind: input, shape index: {}]   ;;  %s1322_s6 = inlined_call_operand.hbm [shape: f32[2,4,8,128], index: 6, kind: output, shape index: {}]  }
   0x1   :  { %13 = vsyncpa [#allocation3 + $0x1], 0  ;;  %s1140_s21 = smov 0   ;;  %s1142_s22 = smov 0  }
   0x2   :  { %s1144_s23 = smov 0   ;;  %s1146_s24 = smov 0  }
   0x3   :  { %s1148_s25 = smov 0   ;;  %s1150_s26 = smov 0  }
   0x4 LB: > { %s853_s27 = sadd.s32 4294967295, %s1100_s26   ;;  %s854_s28 = sadd.s32 4294967294, %s1100_s26   ;;  %s1100_s26 = sphi %s1150_s26, %s19_s26   ;;  %s1096_s25 = sphi %s1148_s25, %s1329_s25   ;;  %s1092_s24 = sphi %s1146_s24, %s1328_s24   ;;  %s1088_s23 = sphi %s1144_s23, %s1327_s23   ;;  %s1084_s22 = sphi %s1142_s22, %s1326_s22   ;;  %s1080_s21 = sphi %s1140_s21, %s1325_s21  }
   0x5   : > { %s34_s29 = sadd.s32 1, %s1096_s25  ;;  %s207_s30 = sadd.s32 1, %s1088_s23 }
   0x6   : > { %p36_p0 = scmp.ge.s32.totalorder %s34_s29, 2  ;;  %p217_p1 = scmp.ne.s32.totalorder %s1088_s23, %s1084_s22 }
   0x7   : > { %p218_p2 = scmp.eq.s32.totalorder %s853_s27, 1  ;;  %p223_p3 = scmp.ne.s32.totalorder %s1084_s22, %s1080_s21 }
   0x8   : > { %s1331_s29 = smov (%p36_p0, %s34_s29), 0  ;;  %p224_p5 = scmp.eq.s32.totalorder %s854_s28, 1 }
   0x9   : > { %p1180_p4 = por %p218_p2, %p217_p1  ;;  %s200_s8 = ssub.s32 %s1096_s25, %s1331_s29 }
   0xa   : > { %p861_p6 = scmp.ge.s32.totalorder %s1100_s26, 1  ;;  %p205_p7 = scmp.eq.s32.totalorder %s200_s8, 0 }
   0xb   : > { %p1187_p8 = por %p224_p5, %p223_p3  ;;  %p294_p9 = scmp.lt.s32.totalorder %s1100_s26, 3 }
   0xc   : > { %s1193_s10 = scalar_select %p205_p7, %s1088_s23, %s207_s30  }
   0xd   : > { %p295_p10 = pnand %p861_p6, %p294_p9 }
   0xe   : > { %p349_p11 = scmp.lt.s32.totalorder (!%p295_p10), %s1092_s24, 1  ;;  %s346_s18 = sand.u32 (!%p295_p10), 1, %s1084_s22  }
   0xf   : > { %298 = sbr.rel (%p295_p10) target bundleno = 320 (0x140), region = 44  ;;  %s862_s20 = sshll.u32 (!%p295_p10), %s346_s18, 5 }
  0x10   : > { %s348_s27 = scalar_lea.vmem (!%p295_p10), [#allocation2], %s862_s20  ;;  %s692_s13 = scalar_lea.sflag (!%p295_p10), [#allocation3], %s346_s18 }
  0x11   : > { %s1042_s17 = scalar_lea.hbm (!%p295_p10), %s1322_s6, 64 }
  0x14   : > { %v940_v0 = vld [vmem:[%s1318_s2 + $0x8] sm:$0xff]  ;;  %v942_v1 = vld [vmem:[%s1318_s2 + $0x18] sm:$0xff]  ;;  %v939_v2 = vld [vmem:[%s1318_s2] sm:$0xff]  ;;  %s350_s19 = scalar_select %p349_p11, %s1092_s24, 1  ;;  %vm410_vm0 = vcmask 261120   ;;  %vm449_vm1 = vcmask 1043456  }
  0x15   : > { %420 = vmatpush.bf16.msra.mxu0 %v940_v0  ;;  %503 = vmatpush.bf16.msra.mxu2 %v942_v1  ;;  %v941_v3 = vld [vmem:[%s1318_s2 + $0x10] sm:$0xff]  ;;  %v946_v4 = vld [vmem:[%s1318_s2 + $0x38] sm:$0xff]  ;;  %v944_v5 = vld [vmem:[%s1318_s2 + $0x28] sm:$0xff]  ;;  %v1102_v27 = vmov 0   ;;  %vm445_vm2 = vcmask 195584  }
  0x16   : > { %s863_s8 = sshll.u32 %s350_s19, 2  ;;  %s948_s11 = smul.u32 12, %s350_s19  ;;  %v945_v6 = vld [vmem:[%s1318_s2 + $0x30] sm:$0xff]  ;;  %v943_v7 = vld [vmem:[%s1318_s2 + $0x20] sm:$0xff]  ;;  %1008 = vset.pattern.permute.xlu1 %v1102_v27  ;;  %1007 = vset.pattern.permute.xlu0 %v1102_v27 }
  0x17   : > { %s355_s14 = scalar_lea.vmem %s1316_s0, %s863_s8  ;;  %v1011_v15 = vld [vmem:[%s1320_s4 + $0x1] ss:$0 sm:$0xff]  ;;  %v1013_v18 = vld [vmem:[%s1320_s4] ss:$0 sm:$0xff]  ;;  %v1015_v21 = vld [vmem:[%s1320_s4 + $0x2] ss:$0 sm:$0xff]  ;;  %1009 = vset.pattern.permute.xlu2 %v1102_v27 }
  0x18   : > { %v385_v8 = vld [vmem:[%s355_s14] sm:$0xf]  ;;  %s360_s28 = scalar_lea.vmem %s1317_s1, %s948_s11  ;;  %s707_s11 = sshll.u32 %s348_s27, 4  ;;  %s708_s11 = int_to_ptr.vmem [resolvable:$true] %s707_s11 }
  0x19   : > { %421 = vmatpush.bf16.msra.mxu0 %v939_v2  ;;  %504 = vmatpush.bf16.msra.mxu2 %v941_v3  ;;  %v388_v9 = vld [vmem:[%s360_s28 + $0x8] sm:$0xf]  ;;  %v938_v13 = vld [vmem:[%s360_s28] sm:$0xff]  ;;  %v389_v14 = vunpack.c.l.bf16 %v385_v8  ;;  %s947_s28 = sshll.u32 %s1092_s24, 5 }
  0x1a   : > { %v441_v10 = vunpack.c.l.b16 %v388_v9  ;;  %v1017_v24 = vld [vmem:[%s1320_s4 + $0x3] ss:$0 sm:$0xff]  ;;  %v1018_v28 = vld [vmem:[%s1321_s5 + $0x1] ss:$0 sm:$0xff]  ;;  %v1019_v29 = vld [vmem:[%s1321_s5] ss:$0 sm:$0xff]  ;;  %s706_s8 = scalar_lea.hbm %s1322_s6, %s947_s28 }
  0x1b   : > { %v516_v16 = vmul.f32 %v1011_v15, %v389_v14  ;;  %v432_v19 = vmul.f32 %v1013_v18, %v389_v14  ;;  %v588_v22 = vmul.f32 %v1015_v21, %v389_v14  ;;  %v660_v25 = vmul.f32 %v1017_v24, %v389_v14  ;;  %v1010_v30 = vld [vmem:[%s1319_s3] ss:$0 sm:$0xff]  ;;  %v1020_v33 = vld [vmem:[%s1321_s5 + $0x3] ss:$0 sm:$0xff]  ;;  %v1012_v35 = vld [vmem:[%s1319_s3 + $0x1] ss:$0 sm:$0xff] }
  0x1c   : > { %873 = vmatmul.msk.bf16.vlgmr.msra.gmra.mxu0 %vm410_vm0, %v385_v8  ;;  %892 = vmatmul.msk.bf16.vlgmr.msra.gmra.mxu2 %vm410_vm0, %v385_v8  ;;  %v443_v11 = vpack.c.b16 %v441_v10, %v441_v10  ;;  %v1014_v40 = vld [vmem:[%s1319_s3 + $0x2] ss:$0 sm:$0xff]  ;;  %v1016_v46 = vld [vmem:[%s1319_s3 + $0x3] ss:$0 sm:$0xff]  ;;  %s709_s12 = sshll.u32 %s706_s8, 4  ;;  %s710_s12 = int_to_ptr.hbm [resolvable:$true] %s709_s12 }
  0x1d   : > { %647 = vmatpush.bf16.msrb.mxu2 %v946_v4  ;;  %575 = vmatpush.bf16.msrb.mxu0 %v944_v5  ;;  %v517_v17 = vsel %vm410_vm0, %v516_v16, 0.0  ;;  %v433_v20 = vsel %vm410_vm0, %v432_v19, 0.0  ;;  %v589_v23 = vsel %vm410_vm0, %v588_v22, 0.0  ;;  %v661_v26 = vsel %vm410_vm0, %v660_v25, 0.0  ;;  %v1021_v41 = vld [vmem:[%s1321_s5 + $0x2] ss:$0 sm:$0xff] }
  0x1e   : > { %v451_v12 = vsel %vm449_vm1, %v443_v11, 0  ;;  %518 = vadd.xlane.f32.xlu1 %v517_v17  ;;  %434 = vadd.xlane.f32.xlu0 %v433_v20  ;;  %s1036_s14 = sshra.s32 %s710_s12, 4  ;;  %s1037_s14 = int_to_ptr.hbm [resolvable:$true] %s1036_s14 }
  0x1f   : > { %459 = vmatpush.bf16.msra.mxu1 %v451_v12  ;;  %529 = vmatpush.bf16.msra.mxu3 %v451_v12  ;;  %s1038_s24 = scalar_lea.hbm %s1037_s14, 32  ;;  %p1043_p1 = scmp.lt.s32.totalorder %s1037_s14, %s1322_s6 }
  0x20   : > { %590 = vadd.xlane.f32.xlu2 %v589_v23  ;;  %p1039_p12 = scmp.ne.s32.totalorder %s1037_s14, %s1038_s24  ;;  %p1044_p2 = scmp.lt.s32.totalorder %s1042_s17, %s1038_s24 }
  0x21   : > { %648 = vmatpush.bf16.msrb.mxu2 %v945_v6  ;;  %576 = vmatpush.bf16.msrb.mxu0 %v943_v7 }
  0x22   : > { %p1040_p13 = pnand %p1039_p12, %p1180_p4  ;;  %p1045_p3 = por %p1044_p2, %p1043_p1 }
  0x23   : > { %460 = vmatpush.bf16.msra.mxu1 %v938_v13  ;;  %530 = vmatpush.bf16.msra.mxu3 %v938_v13 }
  0x24   : > { %p1041_p0 = pneg %p1040_p13 }
  0x26   : > { %p1046_p5 = pnand %p1045_p3, %p1041_p0 }
  0x27   : > { %673 = vmatpush.bf16.msrb.mxu3 %v451_v12  ;;  %601 = vmatpush.bf16.msrb.mxu1 %v451_v12 }
  0x28   : > { %662 = vadd.xlane.f32.xlu2 %v661_v26 }
  0x2b   : > { %602 = vmatpush.bf16.msrb.mxu1 %v938_v13  ;;  %674 = vmatpush.bf16.msrb.mxu3 %v938_v13 }
  0x2c   : > { %910 = vmatmul.msk.bf16.vlgmr.msrb.gmra.mxu0 %vm410_vm0, %v385_v8  ;;  %928 = vmatmul.msk.bf16.vlgmr.msrb.gmra.mxu2 %vm410_vm0, %v385_v8 }
  0x32   : > { %470 = vperm.xlu0 %1007, %v1019_v29  }
  0x37   : > { %541 = vperm.xlu1 %1008, %v1018_v28  }
  0x3f   : > { %685 = vperm.xlu1 %1008, %v1020_v33  }
  0x40   : > { %613 = vperm.xlu2 %1009, %v1021_v41  }
  0x91   : > { %v435_v52 = vpop.xlane.xlu0 %434  ;;  %v519_v58 = vpop.xlane.xlu1 %518 }
  0x93   : > { %v591_v53 = vpop.xlane.xlu2 %590 }
  0x99   : > { %v423_v31 = vpop.f32.mrf.mxu0 }
  0x9a   : > { %v424_v32 = vadd.f32 %v1010_v30, %v423_v31 }
  0x9b   : > { %v663_v59 = vpop.xlane.xlu2 %662 }
  0x9c   : > { %v427_v34 = vpack.c.bf16 %v424_v32, %v424_v32 }
  0x9e   : > { %878 = vmatmul.msk.bf16.vlgmr.msra.gmra.mxu1 %vm445_vm2, %v427_v34 }
  0x9f   : > { %v506_v36 = vpop.f32.mrf.mxu2 }
  0xa0   : > { %v507_v37 = vadd.f32 %v1012_v35, %v506_v36 }
  0xa1   : > { %v425_v38 = vpop.f32.mrf.mxu0 }
  0xa2   : > { %v510_v39 = vpack.c.bf16 %v507_v37, %v507_v37 }
  0xa3   : > { %v614_v2 = vpop.permute.xlu2 %613 }
  0xa4   : > { %894 = vmatmul.msk.bf16.vlgmr.msra.gmra.mxu3 %vm445_vm2, %v510_v39  ;;  %v471_v55 = vpop.permute.xlu0 %470 }
  0xa7   : > { %v508_v42 = vpop.f32.mrf.mxu2 }
  0xa9   : > { %v578_v43 = vpop.f32.mrf.mxu0  ;;  %v542_v62 = vpop.permute.xlu1 %541 }
  0xaa   : > { %v579_v44 = vadd.f32 %v1014_v40, %v578_v43 }
  0xac   : > { %v582_v45 = vpack.c.bf16 %v579_v44, %v579_v44 }
  0xae   : > { %912 = vmatmul.msk.bf16.vlgmr.msrb.gmra.mxu1 %vm445_vm2, %v582_v45 }
  0xaf   : > { %v650_v47 = vpop.f32.mrf.mxu2 }
  0xb0   : > { %v651_v48 = vadd.f32 %v1016_v46, %v650_v47 }
  0xb1   : > { %v580_v49 = vpop.f32.mrf.mxu0  ;;  %v686_v9 = vpop.permute.xlu1 %685 }
  0xb2   : > { %v654_v50 = vpack.c.bf16 %v651_v48, %v651_v48 }
  0xb4   : > { %930 = vmatmul.msk.bf16.vlgmr.msrb.gmra.mxu3 %vm445_vm2, %v654_v50 }
  0xb7   : > { %v652_v51 = vpop.f32.mrf.mxu2 }
 0x11b   : > { %v462_v54 = vpop.f32.mrf.mxu1 }
 0x11c   : > { %v463_v56 = vadd.f32 %v462_v54, %v435_v52 }
 0x11e   : > { %v473_v57 = vadd.f32 %v471_v55, %v463_v56 }
 0x120   : > { %474 = vst [vmem:[%s348_s27] sm:$0xff] %v473_v57 }
 0x123   : > { %v464_v60 = vpop.f32.mrf.mxu1 }
 0x127   : > { %v532_v61 = vpop.f32.mrf.mxu3 }
 0x128   : > { %v533_v63 = vadd.f32 %v532_v61, %v519_v58 }
 0x12a   : > { %v544_v0 = vadd.f32 %v542_v62, %v533_v63 }
 0x12b   : > { %v604_v1 = vpop.f32.mrf.mxu1 }
 0x12c   : > { %896 = vst [vmem:[%s348_s27 + $0x8] sm:$0xff] %v544_v0  ;;  %v605_v3 = vadd.f32 %v604_v1, %v591_v53 }
 0x12e   : > { %v616_v4 = vadd.f32 %v614_v2, %v605_v3 }
 0x12f   : > { %v534_v5 = vpop.f32.mrf.mxu3 }
 0x130   : > { %914 = vst [vmem:[%s348_s27 + $0x10] sm:$0xff] %v616_v4 }
 0x133   : > { %v606_v6 = vpop.f32.mrf.mxu1 }
 0x137   : > { %v676_v7 = vpop.f32.mrf.mxu3 }
 0x138   : > { %v677_v8 = vadd.f32 %v676_v7, %v663_v59 }
 0x13a   : > { %v688_v10 = vadd.f32 %v686_v9, %v677_v8 }
 0x13c   : > { %932 = vst [vmem:[%s348_s27 + $0x18] sm:$0xff] %v688_v10 }
 0x13d   : > { %1049 = shalt.err (!%p1046_p5)
}
 0x13e   : > { %s1103_s18 = smov 128   ;;  %s1104_s27 = smov 8  }
 0x13f   : > { %949 = dma.vmem_to_hbm [thread:$0]  (%p1180_p4), %s708_s11, 512, %s710_s12, %s692_s13, %s1103_s18, %s1103_s18, %s1104_s27   ;;  %v678_v11 = vpop.f32.mrf.mxu3 }
 0x140 PF: > { %p955_p6 = scmp.ge.s32.totalorder %s1100_s26, 2  ;;  %s724_s19 = sand.u32 1, %s1080_s21  }
 0x141   : > { %s725_s30 = scalar_lea.sflag [#allocation3], %s724_s19 }
 0x142   : > { %p952_p7 = pnand %p955_p6, %p1187_p8 }
 0x144   : > { %p953_p9 = pneg %p952_p7 }
 0x146   : > { %1075 = dma.done.wait (%p953_p9), %s725_s30, 512  }
 0x147   : > { %1077 = vsyncadd (%p953_p9), %s725_s30, 4294966784  ;;  %s19_s26 = sadd.s32 1, %s1100_s26   ;;  %s1325_s21 = smov %s1084_s22 }
 0x148   : > { %p16_p10 = scmp.ge.s32.totalorder %s19_s26, 4   ;;  %s1326_s22 = smov %s1088_s23 }
 0x149   : > { %s1327_s23 = smov %s1193_s10  ;;  %s1328_s24 = smov %s1096_s25 }
 0x14a   : > { %s1329_s25 = smov %s1331_s29  ;;  %18 = sbr.rel (!%p16_p10) target bundleno = 4 (0x4), region = 109 }
 0x14f   :  { %731 = vsyncpa [#allocation3], 1 }
 0x150   :  { %733 = vsyncpa [#allocation3 + $0x1], 1 }

</bundles_post_ra>
